<compile_context>
chip_gen: v5e
topology: v5e:2x2
jax: 0.10.0
libtpu: 0.0.40
codegen_flags: <defaults>
</compile_context>

<pallas_src>
import math

import jax
import jax.numpy as jnp
from jax.experimental import pallas as pl
from jax.experimental.pallas import tpu as pltpu

d_k = d_v = 32
_SCALE = 1.0 / math.sqrt(d_k)          # module uses the global d_k for the scale
_MASK_FILL = -1000000000.0             # same constant as masked_fill_ in the module


# --------------------------------------------------------------------------- #
# Kernels
# --------------------------------------------------------------------------- #
def _scores_exp(q, k, mask_i8, k_transposed):
    """Masked, scaled scores -> unnormalized exp and row denominator.

    q: (TB, Lq, Dk) bf16; k: (TB, Lk, Dk) or (TB, Dk, Lk) bf16;
    mask_i8: (TB, Lq, Lk) int8 (nonzero = masked).
    Returns p (TB, Lq, Lk) f32 and denom (TB, Lq, 1) f32.
    """
    if k_transposed:
        s = jnp.einsum("bqd,bdk->bqk", q, k, preferred_element_type=jnp.float32)
    else:
        s = jnp.einsum("bqd,bkd->bqk", q, k, preferred_element_type=jnp.float32)
    s = s * _SCALE
    s = jnp.where(mask_i8 != 0, _MASK_FILL, s)          # masked_fill_ semantics
    m = jnp.max(s, axis=-1, keepdims=True)
    p = jnp.exp(s - m)                                   # EUP
    denom = jnp.sum(p, axis=-1, keepdims=True)
    return p, denom


def _pack_heads(x):
    """(TB, Lq, W) -> (Lq, TB*W): pack heads along lanes for one dense store."""
    tb = x.shape[0]
    return jnp.concatenate([x[h] for h in range(tb)], axis=-1)


def _make_ctx_kernel(k_transposed):
    def kernel(q_ref, k_ref, v_ref, mask_ref, ctx_ref):
        p, denom = _scores_exp(q_ref[...], k_ref[...], mask_ref[...], k_transposed)
        v = v_ref[...]                                   # (TB, Lk, Dv) bf16
        ctx = jnp.einsum("bqk,bkd->bqd", p.astype(v.dtype), v,
                         preferred_element_type=jnp.float32)   # (TB, Lq, Dv) f32
        # Deferred softmax normalization: scale the (small) context instead of p.
        ctx = ctx * pl.reciprocal(denom, approx=True)
        packed = _pack_heads(ctx)                        # (Lq, TB*Dv) lane-dense
        ctx_ref[0] = packed.astype(ctx_ref.dtype)        # single dense store
    return kernel


def _make_attn_kernel(k_transposed):
    def kernel(q_ref, k_ref, mask_ref, attn_ref):
        p, denom = _scores_exp(q_ref[...], k_ref[...], mask_ref[...], k_transposed)
        attn = p / denom                                 # exact in the parse path
        packed = _pack_heads(attn)                       # (Lq, TB*Lk)
        attn_ref[0] = packed.astype(attn_ref.dtype)
    return kernel


# --------------------------------------------------------------------------- #
# Block-size / VMEM heuristics (chip-aware)
# --------------------------------------------------------------------------- #
def _tpu_vmem_capacity():
    try:
        return int(pltpu.get_tpu_info().vmem_capacity_bytes)
    except Exception:
        return 64 * 1024 * 1024        # conservative (v7x-sized) fallback


def _pick_block_heads(BH, Lq, Lk, Dk, Dv, out_bytes, vmem_cap):
    """Heads per grid step: multiple of 4 (lane-dense output), VMEM-bounded."""
    budget = min(vmem_cap // 4, 24 * 1024 * 1024)
    per_head = (
        2 * 2 * (Lq * Dk + Lk * Dk + Lk * Dv)   # bf16 q/k/v, double-buffered
        + 2 * Lq * Lk                            # int8 mask, double-buffered
        + (4 + 4 + 2) * Lq * Lk                  # live f32 scores + f32 exp + bf16 p
        + 4 * Lq * Dv                            # f32 ctx accumulator
        + 2 * out_bytes * Lq * Dv                # packed output slab, double-buffered
    )
    cap = max(1, budget // per_head)
    if BH < 4 or cap < 4:
        # Tiny workload or huge rows: accept lane-sparse stores rather than
        # blowing VMEM.  TODO(synk): flash-style KV tiling for huge Lq*Lk.
        return max(1, min(BH, cap))
    tb = (min(cap, BH) // 4) * 4
    if BH >= 8:
        # Keep >= 2 grid steps so both v7x TensorCores get work.
        half = max(4, (((BH + 1) // 2) // 4) * 4)
        tb = min(tb, half)
    return max(4, tb)


def _compiler_params(vmem_cap):
    return pltpu.CompilerParams(
        dimension_semantics=("parallel",),
        vmem_limit_bytes=min(vmem_cap * 3 // 4, 96 * 1024 * 1024),
    )


# --------------------------------------------------------------------------- #
# Wrapper
# --------------------------------------------------------------------------- #
def scaled_dot_product_attention(Q, K, V, attn_mask, stage="train"):
    """JAX/Pallas equivalent of ScaledDotProductAttention.forward."""
    B, H, Lq, Dk = Q.shape
    Lk = K.shape[2]
    Dv = V.shape[3]
    BH = B * H
    out_dtype = Q.dtype
    out_bytes = jnp.dtype(out_dtype).itemsize

    vmem_cap = _tpu_vmem_capacity()
    TB = _pick_block_heads(BH, Lq, Lk, Dk, Dv, out_bytes, vmem_cap)
    nb = -(-BH // TB)
    BH_pad = nb * TB

    cdt = jnp.bfloat16
    q = Q.reshape(BH, Lq, Dk).astype(cdt)
    k = K.reshape(BH, Lk, Dk).astype(cdt)
    # Raw mask as int8 (1 B/elem) -- the select happens inside the kernel.
    mask = (jnp.broadcast_to(attn_mask, (B, H, Lq, Lk))
            .reshape(BH, Lq, Lk).astype(jnp.int8))

    # Lane-dense, MXU-native K layout for long key rows.
    k_transposed = Lk >= 128
    if k_transposed:
        k = jnp.swapaxes(k, 1, 2)                        # (BH, Dk, Lk)

    if BH_pad != BH:                                     # pad heads to TB multiple
        pad = BH_pad - BH
        q = jnp.pad(q, ((0, pad), (0, 0), (0, 0)))
        k = jnp.pad(k, ((0, pad), (0, 0), (0, 0)))
        mask = jnp.pad(mask, ((0, pad), (0, 0), (0, 0)))

    cparams = _compiler_params(vmem_cap)
    k_block = (TB, Dk, Lk) if k_transposed else (TB, Lk, Dk)

    if stage == "parse":
        # torch: returns softmax(scores) (squeezed); context is never computed.
        attn_packed = pl.pallas_call(
            _make_attn_kernel(k_transposed),
            out_shape=jax.ShapeDtypeStruct((nb, Lq, TB * Lk), out_dtype),
            grid=(nb,),
            in_specs=[
                pl.BlockSpec((TB, Lq, Dk), lambda i: (i, 0, 0)),
                pl.BlockSpec(k_block, lambda i: (i, 0, 0)),
                pl.BlockSpec((TB, Lq, Lk), lambda i: (i, 0, 0)),
            ],
            out_specs=pl.BlockSpec((1, Lq, TB * Lk), lambda i: (i, 0, 0)),
            compiler_params=cparams,
        )(q, k, mask)

        at = (attn_packed.reshape(nb, Lq, TB, Lk)
              .transpose(0, 2, 1, 3)
              .reshape(BH_pad, Lq, Lk)[:BH]
              .reshape(B, H, Lq, Lk))
        # torch: attn.squeeze(dim=0).squeeze(dim=0)
        if at.shape[0] == 1:
            at = jnp.squeeze(at, axis=0)
        if at.shape[0] == 1:
            at = jnp.squeeze(at, axis=0)
        # TODO(synk): torch returns a host numpy array here; we return a JAX array.
        return at

    v = V.reshape(BH, Lk, Dv).astype(cdt)
    if BH_pad != BH:
        v = jnp.pad(v, ((0, BH_pad - BH), (0, 0), (0, 0)))

    ctx_packed = pl.pallas_call(
        _make_ctx_kernel(k_transposed),
        out_shape=jax.ShapeDtypeStruct((nb, Lq, TB * Dv), out_dtype),
        grid=(nb,),
        in_specs=[
            pl.BlockSpec((TB, Lq, Dk), lambda i: (i, 0, 0)),
            pl.BlockSpec(k_block, lambda i: (i, 0, 0)),
            pl.BlockSpec((TB, Lk, Dv), lambda i: (i, 0, 0)),
            pl.BlockSpec((TB, Lq, Lk), lambda i: (i, 0, 0)),
        ],
        out_specs=pl.BlockSpec((1, Lq, TB * Dv), lambda i: (i, 0, 0)),
        compiler_params=cparams,
    )(q, k, v, mask)

    # Unpack the lane-dense slabs back to the module's (B, H, Lq, Dv) layout.
    ctx = (ctx_packed.reshape(nb, Lq, TB, Dv)
           .transpose(0, 2, 1, 3)
           .reshape(BH_pad, Lq, Dv)[:BH]
           .reshape(B, H, Lq, Dv))
    return ctx


# --------------------------------------------------------------------------- #
# Reference + tests
# --------------------------------------------------------------------------- #
def _reference(Q, K, V, attn_mask):
    # Reference with inputs rounded to bf16 (matches the kernel's storage
    # precision); math in f32.
    q = Q.astype(jnp.bfloat16).astype(jnp.float32)
    k = K.astype(jnp.bfloat16).astype(jnp.float32)
    v = V.astype(jnp.bfloat16).astype(jnp.float32)
    scores = jnp.einsum("bhqd,bhkd->bhqk", q, k) * _SCALE
    scores = jnp.where(attn_mask, _MASK_FILL, scores)
    attn = jax.nn.softmax(scores, axis=-1)
    ctx = jnp.einsum("bhqk,bhkd->bhqd", attn, v)
    return ctx, attn


if __name__ == "__main__":
    key = jax.random.PRNGKey(0)

    def make_inputs(B, H, L, masked_tail):
        kq, kk, kv = jax.random.split(jax.random.fold_in(key, B * 131 + H * 17 + L), 3)
        Q = jax.random.normal(kq, (B, H, L, d_k), dtype=jnp.float32)
        K = jax.random.normal(kk, (B, H, L, d_k), dtype=jnp.float32)
        V = jax.random.normal(kv, (B, H, L, d_v), dtype=jnp.float32)
        attn_mask = jnp.zeros((B, H, L, L), dtype=jnp.bool_)
        attn_mask = attn_mask.at[..., L - masked_tail:].set(True)
        return Q, K, V, attn_mask

    # Case 1: module-sized small case (train + parse paths).
    Q, K, V, attn_mask = make_inputs(2, 2, 8, 2)
    ctx = scaled_dot_product_attention(Q, K, V, attn_mask, stage="train")
    jax.block_until_ready(ctx)
    ref_ctx, ref_attn = _reference(Q, K, V, attn_mask)
    assert ctx.shape == (2, 2, 8, d_v)
    assert jnp.allclose(ctx, ref_ctx, atol=3e-2, rtol=3e-2), "ctx mismatch vs reference"

    at = scaled_dot_product_attention(Q, K, V, attn_mask, stage="parse")
    jax.block_until_ready(at)
    assert at.shape == (2, 2, 8, 8)
    assert jnp.allclose(at, ref_attn, atol=2e-2, rtol=2e-2), "attn mismatch vs reference"

    # Case 2: exercises lane-dense packing, head padding (BH=6 -> 8, 2 grid
    # steps) and the transposed-K (Lk >= 128) layout.
    Q2, K2, V2, attn_mask2 = make_inputs(3, 2, 128, 28)
    ctx2 = scaled_dot_product_attention(Q2, K2, V2, attn_mask2, stage="train")
    jax.block_until_ready(ctx2)
    ref_ctx2, _ = _reference(Q2, K2, V2, attn_mask2)
    assert ctx2.shape == (3, 2, 128, d_v)
    assert jnp.allclose(ctx2, ref_ctx2, atol=3e-2, rtol=3e-2), "ctx2 mismatch vs reference"

    print("KERNEL_OK")
</pallas_src>

<mosaic_0001>
module attributes {stable_mosaic.version = 11 : i64} {
  func.func @kernel(%arg0: i32, %arg1: memref<4x8x32xbf16, #tpu.memory_space<vmem>>, %arg2: memref<4x8x32xbf16, #tpu.memory_space<vmem>>, %arg3: memref<4x8x32xbf16, #tpu.memory_space<vmem>>, %arg4: memref<4x8x8xi8, #tpu.memory_space<vmem>>, %arg5: memref<1x8x128xf32, #tpu.memory_space<vmem>>) attributes {dimension_semantics = [#tpu.dimension_semantics<parallel>], iteration_bounds = array<i64: 1>, scalar_prefetch = 0 : i64, scratch_operands = 0 : i64, tpu.core_type = #tpu.core_type<tc>, window_params = [{transform_indices = @transform_0, window_bounds = array<i64: 4, 8, 32>}, {transform_indices = @transform_1, window_bounds = array<i64: 4, 8, 32>}, {transform_indices = @transform_2, window_bounds = array<i64: 4, 8, 32>}, {transform_indices = @transform_3, window_bounds = array<i64: 4, 8, 8>}, {transform_indices = @transform_4, window_bounds = array<i64: 1, 8, 128>}]} {
    %c0 = arith.constant 0 : index
    %c0_0 = arith.constant 0 : index
    %c0_1 = arith.constant 0 : index
    %0 = vector.load %arg1[%c0, %c0_0, %c0_1] : memref<4x8x32xbf16, #tpu.memory_space<vmem>>, vector<4x8x32xbf16>
    %c0_2 = arith.constant 0 : index
    %c0_3 = arith.constant 0 : index
    %c0_4 = arith.constant 0 : index
    %1 = vector.load %arg2[%c0_2, %c0_3, %c0_4] : memref<4x8x32xbf16, #tpu.memory_space<vmem>>, vector<4x8x32xbf16>
    %c0_5 = arith.constant 0 : index
    %c0_6 = arith.constant 0 : index
    %c0_7 = arith.constant 0 : index
    %2 = vector.load %arg4[%c0_5, %c0_6, %c0_7] : memref<4x8x8xi8, #tpu.memory_space<vmem>>, vector<4x8x8xi8>
    "tpu.trace_start"() <{level = 10 : i32, message = "bqd,bkd->bqk"}> : () -> ()
    %cst = arith.constant dense<0.000000e+00> : vector<4x8x8xf32>
    %3 = tpu.matmul %0, %1, %cst {dimension_numbers = #tpu.dot_dimension_numbers<[2], [2], [1], [1], [0, 0, 0, 1, 1, 1], [0], [0]>} : vector<4x8x32xbf16>, vector<4x8x32xbf16>, vector<4x8x8xf32> -> vector<4x8x8xf32>
    "tpu.trace_stop"() : () -> ()
    %cst_8 = arith.constant 0.176776692 : f32
    %4 = vector.broadcast %cst_8 : f32 to vector<4x8x8xf32>
    %5 = arith.mulf %3, %4 : vector<4x8x8xf32>
    %c0_i8 = arith.constant 0 : i8
    %6 = vector.broadcast %c0_i8 : i8 to vector<4x8x8xi8>
    %7 = arith.cmpi ne, %2, %6 : vector<4x8x8xi8>
    %cst_9 = arith.constant -1.000000e+09 : f32
    %8 = vector.broadcast %cst_9 : f32 to vector<4x8x8xf32>
    %9 = arith.select %7, %8, %5 : vector<4x8x8xi1>, vector<4x8x8xf32>
    %cst_10 = arith.constant dense<0xFF800000> : vector<4x8xf32>
    %10 = vector.multi_reduction <maximumf>, %9, %cst_10 [2] : vector<4x8x8xf32> to vector<4x8xf32>
    %11 = vector.shape_cast %10 : vector<4x8xf32> to vector<4x8x1xf32>
    %12 = vector.broadcast %11 : vector<4x8x1xf32> to vector<4x8x8xf32>
    %13 = arith.subf %9, %12 : vector<4x8x8xf32>
    %14 = math.exp %13 : vector<4x8x8xf32>
    %cst_11 = arith.constant dense<0.000000e+00> : vector<4x8xf32>
    %15 = vector.multi_reduction <add>, %14, %cst_11 [2] : vector<4x8x8xf32> to vector<4x8xf32>
    %16 = vector.shape_cast %15 : vector<4x8xf32> to vector<4x8x1xf32>
    %c0_12 = arith.constant 0 : index
    %c0_13 = arith.constant 0 : index
    %c0_14 = arith.constant 0 : index
    %17 = vector.load %arg3[%c0_12, %c0_13, %c0_14] : memref<4x8x32xbf16, #tpu.memory_space<vmem>>, vector<4x8x32xbf16>
    %18 = arith.truncf %14 : vector<4x8x8xf32> to vector<4x8x8xbf16>
    "tpu.trace_start"() <{level = 10 : i32, message = "bqk,bkd->bqd"}> : () -> ()
    %cst_15 = arith.constant dense<0.000000e+00> : vector<4x8x32xf32>
    %19 = tpu.matmul %18, %17, %cst_15 {dimension_numbers = #tpu.dot_dimension_numbers<[2], [1], [1], [2], [0, 0, 0, 1, 1, 2], [0], [0]>} : vector<4x8x8xbf16>, vector<4x8x32xbf16>, vector<4x8x32xf32> -> vector<4x8x32xf32>
    "tpu.trace_stop"() : () -> ()
    %20 = tpu.reciprocal %16 {approx = true} : vector<4x8x1xf32> -> vector<4x8x1xf32>
    %21 = vector.broadcast %20 : vector<4x8x1xf32> to vector<4x8x32xf32>
    %22 = arith.mulf %19, %21 : vector<4x8x32xf32>
    %23 = vector.extract_strided_slice %22 {offsets = [0, 0, 0], sizes = [1, 8, 32], strides = [1, 1, 1]} : vector<4x8x32xf32> to vector<1x8x32xf32>
    %24 = vector.shape_cast %23 : vector<1x8x32xf32> to vector<8x32xf32>
    %25 = vector.extract_strided_slice %22 {offsets = [1, 0, 0], sizes = [1, 8, 32], strides = [1, 1, 1]} : vector<4x8x32xf32> to vector<1x8x32xf32>
    %26 = vector.shape_cast %25 : vector<1x8x32xf32> to vector<8x32xf32>
    %27 = vector.extract_strided_slice %22 {offsets = [2, 0, 0], sizes = [1, 8, 32], strides = [1, 1, 1]} : vector<4x8x32xf32> to vector<1x8x32xf32>
    %28 = vector.shape_cast %27 : vector<1x8x32xf32> to vector<8x32xf32>
    %29 = vector.extract_strided_slice %22 {offsets = [3, 0, 0], sizes = [1, 8, 32], strides = [1, 1, 1]} : vector<4x8x32xf32> to vector<1x8x32xf32>
    %30 = vector.shape_cast %29 : vector<1x8x32xf32> to vector<8x32xf32>
    %31 = tpu.concatenate %24, %26, %28, %30 in 1 : vector<8x32xf32>, vector<8x32xf32>, vector<8x32xf32>, vector<8x32xf32> -> vector<8x128xf32>
    %c0_16 = arith.constant 0 : index
    %c0_17 = arith.constant 0 : index
    %c0_18 = arith.constant 0 : index
    %32 = vector.load %arg5[%c0_16, %c0_17, %c0_18] : memref<1x8x128xf32, #tpu.memory_space<vmem>>, vector<1x8x128xf32>
    %33 = vector.shape_cast %32 : vector<1x8x128xf32> to vector<8x128xf32>
    %34 = vector.shape_cast %31 : vector<8x128xf32> to vector<1x8x128xf32>
    tpu.vector_store %arg5[%c0_16, %c0_17, %c0_18], %34 {strides = array<i32>} : memref<1x8x128xf32, #tpu.memory_space<vmem>>, vector<1x8x128xf32>,
    return
  }
  func.func @transform_0(%arg0: i32) -> (i32, i32, i32) {
    %c0_i32 = arith.constant 0 : i32
    %c0_i32_0 = arith.constant 0 : i32
    %c0_i32_1 = arith.constant 0 : i32
    return %arg0, %c0_i32, %c0_i32_0 : i32, i32, i32
  }
  func.func @transform_1(%arg0: i32) -> (i32, i32, i32) {
    %c0_i32 = arith.constant 0 : i32
    %c0_i32_0 = arith.constant 0 : i32
    %c0_i32_1 = arith.constant 0 : i32
    return %arg0, %c0_i32, %c0_i32_0 : i32, i32, i32
  }
  func.func @transform_2(%arg0: i32) -> (i32, i32, i32) {
    %c0_i32 = arith.constant 0 : i32
    %c0_i32_0 = arith.constant 0 : i32
    %c0_i32_1 = arith.constant 0 : i32
    return %arg0, %c0_i32, %c0_i32_0 : i32, i32, i32
  }
  func.func @transform_3(%arg0: i32) -> (i32, i32, i32) {
    %c0_i32 = arith.constant 0 : i32
    %c0_i32_0 = arith.constant 0 : i32
    %c0_i32_1 = arith.constant 0 : i32
    return %arg0, %c0_i32, %c0_i32_0 : i32, i32, i32
  }
  func.func @transform_4(%arg0: i32) -> (i32, i32, i32) {
    %c0_i32 = arith.constant 0 : i32
    %c0_i32_0 = arith.constant 0 : i32
    %c0_i32_1 = arith.constant 0 : i32
    return %arg0, %c0_i32, %c0_i32_0 : i32, i32, i32
  }
}

</mosaic_0001>

<bundles_post_ra>
// kernel: tpu_custom_call.1
= control target key start
LH: loop header
LB: loop body
LE: loop exit
PB: predicated region body
PF: predicated region fallthrough
CT: control target
= control target key end

     0   :  { %9 = vsyncpa [#allocation3], 0  ;;  %s609_s0 = inlined_call_operand.hbm [shape: bf16[4,8,32], index: 0, kind: input, shape index: {}]   ;;  %s610_s1 = inlined_call_operand.hbm [shape: bf16[4,8,32], index: 1, kind: input, shape index: {}]   ;;  %s611_s2 = inlined_call_operand.hbm [shape: bf16[4,8,32], index: 2, kind: input, shape index: {}]   ;;  %s612_s3 = inlined_call_operand.hbm [shape: s8[4,8,8], index: 3, kind: input, shape index: {}]   ;;  %s613_s4 = inlined_call_operand.hbm [shape: f32[1,8,128], index: 4, kind: output, shape index: {}]  }
   0x1   :  { %10 = vsyncpa [#allocation6], 0 }
   0x2   :  { %11 = vsyncpa [#allocation9], 0 }
   0x3   :  { %12 = vsyncpa [#allocation4], 0  ;;  %s30_s17 = sshll.u32 %s610_s1, 4  ;;  %s527_s18 = smov [#allocation5]   ;;  %s31_s17 = int_to_ptr.hbm [resolvable:$true] %s30_s17 }
   0x4   :  { %s32_s19 = sshll.u32 %s527_s18, 4  ;;  %s17_s22 = sshll.u32 %s609_s0, 4  ;;  %s33_s19 = int_to_ptr.vmem [resolvable:$true] %s32_s19  ;;  %s18_s22 = int_to_ptr.hbm [resolvable:$true] %s17_s22 }
   0x5   :  { %s528_s23 = smov 64   ;;  %s529_s24 = smov 4  }
   0x6   :  { %38 = dma.hbm_to_vmem [thread:$0]  %s31_s17, 256, %s33_s19, [#allocation6], %s528_s23, %s528_s23, %s529_s24  }
   0x7   :  { %s530_s25 = smov [#allocation2]   ;;  %s43_s1 = sshll.u32 %s611_s2, 4  ;;  %s44_s1 = int_to_ptr.hbm [resolvable:$true] %s43_s1 }
   0x8   :  { %s19_s26 = sshll.u32 %s530_s25, 4  ;;  %s56_s0 = sshll.u32 %s612_s3, 4  ;;  %s20_s26 = int_to_ptr.vmem [resolvable:$true] %s19_s26  ;;  %s57_s0 = int_to_ptr.hbm [resolvable:$true] %s56_s0 }
   0x9   :  { %25 = dma.hbm_to_vmem [thread:$0]  %s18_s22, 256, %s20_s26, [#allocation3], %s528_s23, %s528_s23, %s529_s24  }
   0xa   :  { %s531_s5 = smov [#allocation7]   ;;  %s532_s7 = smov [#allocation8]  }
   0xb   :  { %s45_s6 = sshll.u32 %s531_s5, 4  ;;  %s58_s8 = sshll.u32 %s532_s7, 4  ;;  %s46_s6 = int_to_ptr.vmem [resolvable:$true] %s45_s6  ;;  %s59_s8 = int_to_ptr.vmem [resolvable:$true] %s58_s8 }
   0xc   :  { %51 = dma.hbm_to_vmem [thread:$0]  %s44_s1, 256, %s46_s6, [#allocation6], %s528_s23, %s528_s23, %s529_s24  }
   0xd   :  { %s533_s2 = smov 32   ;;  %s534_s9 = smov 2  }
   0xe   :  { %64 = dma.hbm_to_vmem [thread:$0]  %s57_s0, 128, %s59_s8, [#allocation9], %s533_s2, %s533_s2, %s534_s9  }
   0xf   :  { %519 = dma.done.wait [#allocation3], 256  }
  0x10   :  { %520 = vsyncadd [#allocation3], 4294967040 }
  0x11   :  { %521 = dma.done.wait [#allocation6], 512  }
  0x12   :  { %522 = vsyncadd [#allocation6], 4294966784 }
  0x13   :  { %523 = dma.done.wait [#allocation9], 128  }
  0x14   :  { %524 = vsyncadd [#allocation9], 4294967168  ;;  %vm96_vm0 = vcmask 261120   ;;  %v89_v0 = vld [vmem:[#allocation5 + $0x4] sm:$0xf]  ;;  %v535_v14 = vmov 0  }
  0x15   :  { %v90_v1 = vld [vmem:[#allocation5 + $0x8] sm:$0xf]  ;;  %v91_v2 = vld [vmem:[#allocation5 + $0xc] sm:$0xf]  ;;  %v120_v3 = vsel %vm96_vm0, %v89_v0, 0  ;;  %vm197_vm6 = vcmask 64512  }
  0x16   :  { %v139_v4 = vsel %vm96_vm0, %v90_v1, 0  ;;  %v158_v5 = vsel %vm96_vm0, %v91_v2, 0  ;;  %129 = vmatpush.bf16.xpose.msra.mxu1 %v120_v3  ;;  %v88_v6 = vld [vmem:[#allocation5] sm:$0xf]  ;;  %v85_v8 = vld [vmem:[#allocation2 + $0x4] sm:$0xf] }
  0x17   :  { %148 = vmatpush.bf16.xpose.msra.mxu2 %v139_v4  ;;  %167 = vmatpush.bf16.xpose.msra.mxu3 %v158_v5  ;;  %v101_v7 = vsel %vm96_vm0, %v88_v6, 0  ;;  %v86_v9 = vld [vmem:[#allocation2 + $0x8] sm:$0xf]  ;;  %v87_v10 = vld [vmem:[#allocation2 + $0xc] sm:$0xf]  ;;  %vm245_vm10 = vcmask 1043456  }
  0x18   :  { %110 = vmatpush.bf16.xpose.msra.mxu0 %v101_v7  ;;  %v84_v11 = vld [vmem:[#allocation2] sm:$0xf]  ;;  %v93_v12 = vld [vmem:[#allocation8 + $0x2] sm:$0x3]  ;;  %v92_v13 = vld [vmem:[#allocation8] sm:$0x3] }
  0x19   :  { %vm178_vm1 = vnez %v93_v12  ;;  %v94_v16 = vld [vmem:[#allocation8 + $0x4] sm:$0x3]  ;;  %vm177_vm2 = vnez %v92_v13  ;;  %v95_v19 = vld [vmem:[#allocation8 + $0x6] sm:$0x3]  ;;  %v235_v45 = vld [vmem:[#allocation7 + $0x4] sm:$0xf] }
  0x1a   :  { %v182_v15 = vsel %vm178_vm1, 16843009, %v535_v14  ;;  %vm179_vm3 = vnez %v94_v16  ;;  %v181_v18 = vsel %vm177_vm2, 16843009, %v535_v14  ;;  %vm180_vm5 = vnez %v95_v19  ;;  %v236_v47 = vld [vmem:[#allocation7 + $0x8] sm:$0xf] }
  0x1b   :  { %v186_v17 = vunpack.c.0.s8 %v182_v15  ;;  %v183_v20 = vsel %vm179_vm3, 16843009, %v535_v14  ;;  %v185_v22 = vunpack.c.0.s8 %v181_v18  ;;  %v184_v28 = vsel %vm180_vm5, 16843009, %v535_v14  ;;  %v237_v48 = vld [vmem:[#allocation7 + $0xc] sm:$0xf] }
  0x1c   :  { %v187_v25 = vunpack.c.0.s8 %v183_v20  ;;  %v188_v31 = vunpack.c.0.s8 %v184_v28  ;;  %v266_v46 = vsel %vm245_vm10, %v235_v45, 0  ;;  %v285_v49 = vsel %vm245_vm10, %v236_v47, 0  ;;  %v234_v51 = vld [vmem:[#allocation7] sm:$0xf]  ;;  %s536_s3 = smov 96   ;;  %s537_s10 = smov [#allocation10]  }
  0x1d   :  { %365 = vmatmul.msk.bf16.vlgmr.msra.gmra.mxu1 %vm96_vm0, %v85_v8  ;;  %vm190_vm4 = vcmp.ne.s32.totalorder %v186_v17, 0  ;;  %vm189_vm7 = vcmp.ne.s32.totalorder %v185_v22, 0  ;;  %v304_v50 = vsel %vm245_vm10, %v237_v48, 0  ;;  %v247_v52 = vsel %vm245_vm10, %v234_v51, 0  ;;  %s350_s11 = sshll.u32 %s537_s10, 4  ;;  %s352_s14 = sshll.u32 %s613_s4, 4  ;;  %s351_s11 = int_to_ptr.vmem [resolvable:$true] %s350_s11  ;;  %s353_s14 = int_to_ptr.hbm [resolvable:$true] %s352_s14 }
  0x1e   :  { %366 = vmatmul.msk.bf16.vlgmr.msra.gmra.mxu2 %vm96_vm0, %v86_v9  ;;  %367 = vmatmul.msk.bf16.vlgmr.msra.gmra.mxu3 %vm96_vm0, %v87_v10  ;;  %vm191_vm8 = vcmp.ne.s32.totalorder %v187_v25, 0  ;;  %vm192_vm9 = vcmp.ne.s32.totalorder %v188_v31, 0  ;;  %vm340_vm11 = vcmask 523264   ;;  %vm342_vm12 = vcmask 785408  }
  0x1f   :  { %364 = vmatmul.msk.bf16.vlgmr.msra.gmra.mxu0 %vm96_vm0, %v84_v11  ;;  %275 = vmatpush.bf16.msrb.mxu1 %v266_v46 }
  0x20   :  { %294 = vmatpush.bf16.msrb.mxu2 %v285_v49  ;;  %313 = vmatpush.bf16.msrb.mxu3 %v304_v50 }
  0x21   :  { %256 = vmatpush.bf16.msrb.mxu0 %v247_v52 }
  0x9a   :  { %v131_v21 = vpop.f32.mrf.mxu1 }
  0x9b   :  { %v174_v23 = vmul.f32 0.17677669, %v131_v21 }
  0x9c   :  { %v112_v24 = vpop.f32.mrf.mxu0 }
  0x9d   :  { %v194_v26 = vsel %vm190_vm4, -1e+09, %v174_v23  ;;  %v173_v27 = vmul.f32 0.17677669, %v112_v24 }
  0x9e   :  { %v201_v29 = vsel %vm197_vm6, %v194_v26, -inf }
  0x9f   :  { %202 = vmax.xlane.f32.xlu1 %v201_v29  ;;  %v193_v34 = vsel %vm189_vm7, -1e+09, %v173_v27 }
  0xa0   :  { %v198_v39 = vsel %vm197_vm6, %v193_v34, -inf }
  0xa1   :  { %v150_v30 = vpop.f32.mrf.mxu2  ;;  %v169_v33 = vpop.f32.mrf.mxu3 }
  0xa2   :  { %v175_v32 = vmul.f32 0.17677669, %v150_v30  ;;  %v133_v35 = vpop.f32.mrf.mxu1  ;;  %v176_v36 = vmul.f32 0.17677669, %v169_v33 }
  0xa4   :  { %v195_v37 = vsel %vm191_vm8, -1e+09, %v175_v32  ;;  %v114_v40 = vpop.f32.mrf.mxu0  ;;  %v196_v41 = vsel %vm192_vm9, -1e+09, %v176_v36 }
  0xa5   :  { %v204_v38 = vsel %vm197_vm6, %v195_v37, -inf  ;;  %v207_v44 = vsel %vm197_vm6, %v196_v41, -inf }
  0xa6   :  { %205 = vmax.xlane.f32.xlu0 %v204_v38 }
  0xa7   :  { %199 = vmax.xlane.f32.xlu1 %v198_v39 }
  0xa9   :  { %v152_v42 = vpop.f32.mrf.mxu2  ;;  %v171_v43 = vpop.f32.mrf.mxu3 }
  0xae   :  { %208 = vmax.xlane.f32.xlu0 %v207_v44 }
 0x112   :  { %v203_v53 = vpop.xlane.xlu1 %202 }
 0x113   :  { %v211_v54 = vsub.f32 %v194_v26, %v203_v53 }
 0x115   :  { %v216_v55 = vmul.f32 1.442695, %v211_v54 }
 0x117   :  { %383 = vpow2.f32 %v216_v55 }
 0x119   :  { %v206_v56 = vpop.xlane.xlu0 %205 }
 0x11a   :  { %v212_v57 = vsub.f32 %v195_v37, %v206_v56  ;;  %v200_v58 = vpop.xlane.xlu1 %199 }
 0x11b   :  { %v210_v60 = vsub.f32 %v193_v34, %v200_v58 }
 0x11c   :  { %v218_v59 = vmul.f32 1.442695, %v212_v57 }
 0x11d   :  { %v384_v61 = vpop.eup %383  ;;  %v214_v62 = vmul.f32 1.442695, %v210_v60 }
 0x11e   :  { %385 = vpow2.f32 %v218_v59  ;;  %v225_v63 = vsel %vm197_vm6, %v384_v61, 0.0  ;;  %v239_v0 = vpack.c.bf16 %v384_v61, %v384_v61 }
 0x11f   :  { %387 = vpow2.f32 %v214_v62  ;;  %226 = vadd.xlane.f32.xlu2 %v225_v63 }
 0x120   :  { %369 = vmatmul.msk.bf16.vlgmr.msrb.gmra.mxu1 %vm197_vm6, %v239_v0 }
 0x121   :  { %v209_v1 = vpop.xlane.xlu0 %208 }
 0x122   :  { %v213_v2 = vsub.f32 %v196_v41, %v209_v1 }
 0x124   :  { %v386_v3 = vpop.eup %385  ;;  %v220_v4 = vmul.f32 1.442695, %v213_v2 }
 0x125   :  { %v240_v5 = vpack.c.bf16 %v386_v3, %v386_v3  ;;  %v388_v6 = vpop.eup %387  ;;  %v228_v7 = vsel %vm197_vm6, %v386_v3, 0.0 }
 0x126   :  { %389 = vpow2.f32 %v220_v4  ;;  %v222_v8 = vsel %vm197_vm6, %v388_v6, 0.0  ;;  %v238_v9 = vpack.c.bf16 %v388_v6, %v388_v6 }
 0x127   :  { %370 = vmatmul.msk.bf16.vlgmr.msrb.gmra.mxu2 %vm197_vm6, %v240_v5  ;;  %229 = vadd.xlane.f32.xlu2 %v228_v7 }
 0x128   :  { %223 = vadd.xlane.f32.xlu1 %v222_v8  ;;  %368 = vmatmul.msk.bf16.vlgmr.msrb.gmra.mxu0 %vm197_vm6, %v238_v9 }
 0x12c   :  { %v390_v10 = vpop.eup %389 }
 0x12d   :  { %v231_v11 = vsel %vm197_vm6, %v390_v10, 0.0  ;;  %v241_v12 = vpack.c.bf16 %v390_v10, %v390_v10 }
 0x12e   :  { %232 = vadd.xlane.f32.xlu0 %v231_v11 }
 0x12f   :  { %371 = vmatmul.msk.bf16.vlgmr.msrb.gmra.mxu3 %vm197_vm6, %v241_v12 }
 0x192   :  { %v227_v13 = vpop.xlane.xlu2 %226 }
 0x193   :  { %391 = vrcp.f32 %v227_v13 }
 0x199   :  { %v392_v14 = vpop.eup %391 }
 0x19a   :  { %v230_v17 = vpop.xlane.xlu2 %229 }
 0x19b   :  { %393 = vrcp.f32 %v230_v17  ;;  %v224_v30 = vpop.xlane.xlu1 %223 }
 0x19d   :  { %v277_v15 = vpop.f32.mrf.mxu1 }
 0x19e   :  { %v324_v16 = vmul.f32 %v392_v14, %v277_v15 }
 0x1a0   :  { %328 = vrot.lane.b32.xlu2 %v324_v16, %s533_s2 }
 0x1a1   :  { %v233_v20 = vpop.xlane.xlu0 %232  ;;  %v394_v21 = vpop.eup %393 }
 0x1a2   :  { %395 = vrcp.f32 %v233_v20 }
 0x1a3   :  { %397 = vrcp.f32 %v224_v30 }
 0x1a5   :  { %v258_v18 = vpop.f32.mrf.mxu0  ;;  %v279_v19 = vpop.f32.mrf.mxu1 }
 0x1a8   :  { %v396_v25 = vpop.eup %395 }
 0x1a9   :  { %v398_v31 = vpop.eup %397 }
 0x1aa   :  { %v296_v22 = vpop.f32.mrf.mxu2  ;;  %v323_v33 = vmul.f32 %v398_v31, %v258_v18 }
 0x1ab   :  { %v325_v23 = vmul.f32 %v394_v21, %v296_v22 }
 0x1ad   :  { %332 = vrot.lane.b32.xlu0 %v325_v23, %s528_s23  ;;  %v260_v24 = vpop.f32.mrf.mxu0 }
 0x1b2   :  { %v298_v26 = vpop.f32.mrf.mxu2  ;;  %v315_v27 = vpop.f32.mrf.mxu3 }
 0x1b3   :  { %v326_v28 = vmul.f32 %v396_v25, %v315_v27 }
 0x1b5   :  { %336 = vrot.lane.b32.xlu1 %v326_v28, %s536_s3 }
 0x1ba   :  { %v317_v29 = vpop.f32.mrf.mxu3 }
 0x1fa   :  { %v329_v32 = vpop.permute.xlu2 %328 }
 0x1fb   :  { %v339_v35 = vsel %vm96_vm0, %v323_v33, %v329_v32 }
 0x21f   :  { %v333_v34 = vpop.permute.xlu0 %332 }
 0x220   :  { %v341_v36 = vsel %vm340_vm11, %v339_v35, %v333_v34 }
 0x227   :  { %v337_v37 = vpop.permute.xlu1 %336 }
 0x228   :  { %v343_v38 = vsel %vm342_vm12, %v341_v36, %v337_v37 }
 0x229   :  { %344 = vst [vmem:[#allocation10] sm:$0xff] %v343_v38 }
 0x22a   :  { %355 = dma.vmem_to_hbm [thread:$0]  %s351_s11, 128, %s353_s14, [#allocation4]  }
 0x22b   :  { %525 = dma.done.wait [#allocation4], 128  }
 0x22c   :  { %526 = vsyncadd [#allocation4], 4294967168 }
 0x22d   :  { %360 = vsyncpa [#allocation3], 1 }
 0x22e   :  { %361 = vsyncpa [#allocation6], 1 }
 0x22f   :  { %362 = vsyncpa [#allocation9], 1 }
 0x230   :  { %363 = vsyncpa [#allocation4], 1 }

</bundles_post_ra>
